<compile_context>
chip_gen: v6e
topology: v6e:2x2x1
jax: 0.10.0
libtpu: 0.0.40
codegen_flags: <defaults>
</compile_context>

<pallas_src>
import functools

import jax
import jax.numpy as jnp
from jax.experimental import pallas as pl
from jax.experimental.pallas import tpu as pltpu

EPS = 1e-5  # nn.LayerNorm default eps


def _round_up(a: int, b: int) -> int:
    return (a + b - 1) // b * b


def make_sublayer_connection_kernel(dropout_p: float, tm: int):
    inv_keep = 1.0 / (1.0 - dropout_p) if dropout_p > 0.0 else 1.0
    # keep element  <=>  hash_bits >= thr,  thr = round(p * 2^32)
    thr = min(int(dropout_p * (2 ** 32)), 2 ** 32 - 1) if dropout_p > 0.0 else 0

    def kernel(seed_ref, x_ref, gamma_ref, beta_ref, w_ref, b_ref, o_ref):
        # ---- LayerNorm(x) over last axis (f32) ----
        x = x_ref[...].astype(jnp.float32)                        # (TM, H)
        mean = jnp.mean(x, axis=-1, keepdims=True)
        centered = x - mean
        var = jnp.mean(centered * centered, axis=-1, keepdims=True)
        y = centered * jax.lax.rsqrt(var + EPS)
        y = y * gamma_ref[...] + beta_ref[...]                    # (TM, H)

        # ---- sublayer(norm(x)) : example sublayer = Linear(H, H) ----
        # bf16 operands for the MXU, f32 accumulation. W arrives already bf16.
        z = jnp.dot(y.astype(jnp.bfloat16), w_ref[...],
                    preferred_element_type=jnp.float32)
        z = z + b_ref[...]

        # ---- dropout (training semantics, inverted dropout) ----
        if dropout_p > 0.0:
            pid = pl.program_id(0)
            # Global (row, col) coordinates -> per-element counter.
            rows = jax.lax.broadcasted_iota(jnp.int32, z.shape, 0)
            cols = jax.lax.broadcasted_iota(jnp.int32, z.shape, 1)
            grow = (pid * tm + rows).astype(jnp.uint32)           # global row
            gcol = cols.astype(jnp.uint32)
            seed = seed_ref[0].astype(jnp.uint32)
            # Stateless 32-bit mixer (murmur-style finalizer) over
            # (seed, global_row, col) -> uniform uint32 bits.
            h = (grow * jnp.uint32(0x9E3779B1)) ^ \
                (gcol * jnp.uint32(0x85EBCA77)) ^ seed
            h = h ^ (h >> 16)
            h = h * jnp.uint32(0x7FEB352D)
            h = h ^ (h >> 15)
            h = h * jnp.uint32(0x846CA68B)
            h = h ^ (h >> 16)
            keep = h >= jnp.uint32(thr)
            z = jnp.where(keep, z * inv_keep, 0.0)

        # ---- residual: x + dropout(sublayer(norm(x))) ----
        # Re-read x from VMEM instead of keeping the f32 copy live.
        o_ref[...] = (x_ref[...].astype(jnp.float32) + z).astype(o_ref.dtype)

    return kernel


@functools.partial(jax.jit, static_argnames=("dropout_p", "tile_rows"))
def sublayer_connection(x, gamma, beta, w, b, seed, *, dropout_p=0.1,
                        tile_rows=512):
    """x: (B, S, H) float32; gamma/beta: (H,); w: (H, H); b: (H,)."""
    B, S, H = x.shape
    R = B * S

    # Row tile: multiple of 8 (f32 sublane), capped by tile_rows; pad R so the
    # grid divides evenly (padded rows are dropped after the call).
    tm = min(tile_rows, _round_up(R, 8))
    R_pad = _round_up(R, tm)
    grid = (R_pad // tm,)

    x2 = x.reshape(R, H)
    if R_pad != R:
        x2 = jnp.pad(x2, ((0, R_pad - R), (0, 0)))

    # Weight resident in VMEM as bf16 (halves HBM traffic / VMEM footprint).
    # TODO(synk): for large H (>= 2048-4096, esp. v7x 64 MiB VMEM) add an
    # output-column grid axis so only an (H, TN) slice of W is resident.
    w_bf16 = w.astype(jnp.bfloat16)

    kernel = make_sublayer_connection_kernel(dropout_p, tm)

    out = pl.pallas_call(
        kernel,
        out_shape=jax.ShapeDtypeStruct((R_pad, H), x.dtype),
        grid_spec=pltpu.PrefetchScalarGridSpec(
            num_scalar_prefetch=1,
            grid=grid,
            in_specs=[
                pl.BlockSpec((tm, H), lambda i, seed_ref: (i, 0)),  # x rows
                pl.BlockSpec((1, H), lambda i, seed_ref: (0, 0)),   # gamma
                pl.BlockSpec((1, H), lambda i, seed_ref: (0, 0)),   # beta
                pl.BlockSpec((H, H), lambda i, seed_ref: (0, 0)),   # sublayer W
                pl.BlockSpec((1, H), lambda i, seed_ref: (0, 0)),   # sublayer b
            ],
            out_specs=pl.BlockSpec((tm, H), lambda i, seed_ref: (i, 0)),
        ),
        compiler_params=pltpu.CompilerParams(
            dimension_semantics=("parallel",),      # rows independent -> megacore
            vmem_limit_bytes=48 * 1024 * 1024,      # headroom on v7x (64 MiB)
        ),
    )(
        jnp.asarray(seed, dtype=jnp.int32).reshape(1),
        x2,
        gamma.reshape(1, H).astype(jnp.float32),
        beta.reshape(1, H).astype(jnp.float32),
        w_bf16,
        b.reshape(1, H).astype(jnp.float32),
    )
    return out[:R].reshape(B, S, H)


def _reference_no_dropout(x, gamma, beta, w, b):
    mean = jnp.mean(x, axis=-1, keepdims=True)
    c = x - mean
    var = jnp.mean(c * c, axis=-1, keepdims=True)
    y = c * jax.lax.rsqrt(var + EPS) * gamma + beta
    return x + (y @ w + b)


if __name__ == "__main__":
    # TODO(synk): H=32 is below a full 128-lane vreg; real transformer widths
    # should keep H a multiple of 128 for lane-dense stores.
    B, S, H = 2, 8, 32
    key = jax.random.PRNGKey(0)
    kx, kw = jax.random.split(key)

    x = jax.random.normal(kx, (B, S, H), dtype=jnp.float32)

    # nn.LayerNorm(size) params: weight=1, bias=0 (default init)
    gamma = jnp.ones((H,), dtype=jnp.float32)
    beta = jnp.zeros((H,), dtype=jnp.float32)

    # Deterministic example `sublayer`: a Linear(H, H).
    w = jax.random.normal(kw, (H, H), dtype=jnp.float32) * (1.0 / jnp.sqrt(H))
    b = jnp.zeros((H,), dtype=jnp.float32)

    # TODO(synk): torch Dropout's bitmask is not bit-reproducible; we use a
    # deterministic counter-based hash PRNG (same statistical semantics, p=0.1).
    out = sublayer_connection(x, gamma, beta, w, b, seed=0, dropout_p=0.1)
    jax.block_until_ready(out)
    assert out.shape == (B, S, H) and out.dtype == jnp.float32

    # Sanity check (dropout disabled) against a pure-JAX reference; loose
    # tolerance because the kernel matmul runs in bf16.
    out_nd = sublayer_connection(x, gamma, beta, w, b, seed=0, dropout_p=0.0)
    ref = _reference_no_dropout(x, gamma, beta, w, b)
    assert jnp.max(jnp.abs(out_nd - ref)) < 1e-1

    print("KERNEL_OK")
</pallas_src>

<mosaic_0001>
module attributes {stable_mosaic.version = 11 : i64} {
  func.func @kernel(%arg0: i32, %arg1: memref<1xi32, #tpu.memory_space<smem>>, %arg2: memref<16x32xf32, #tpu.memory_space<vmem>>, %arg3: memref<1x32xf32, #tpu.memory_space<vmem>>, %arg4: memref<1x32xf32, #tpu.memory_space<vmem>>, %arg5: memref<32x32xbf16, #tpu.memory_space<vmem>>, %arg6: memref<1x32xf32, #tpu.memory_space<vmem>>, %arg7: memref<16x32xf32, #tpu.memory_space<vmem>>) attributes {dimension_semantics = [#tpu.dimension_semantics<parallel>], iteration_bounds = array<i64: 1>, scalar_prefetch = 1 : i64, scratch_operands = 0 : i64, tpu.core_type = #tpu.core_type<tc>, window_params = [{transform_indices = @transform_0, window_bounds = array<i64: 16, 32>}, {pipeline_mode = #tpu.pipeline_mode<synchronous>, transform_indices = @transform_1, window_bounds = array<i64: 1, 32>}, {pipeline_mode = #tpu.pipeline_mode<synchronous>, transform_indices = @transform_2, window_bounds = array<i64: 1, 32>}, {pipeline_mode = #tpu.pipeline_mode<synchronous>, transform_indices = @transform_3, window_bounds = array<i64: 32, 32>}, {pipeline_mode = #tpu.pipeline_mode<synchronous>, transform_indices = @transform_4, window_bounds = array<i64: 1, 32>}, {transform_indices = @transform_5, window_bounds = array<i64: 16, 32>}]} {
    %c0 = arith.constant 0 : index
    %c0_0 = arith.constant 0 : index
    %0 = vector.load %arg2[%c0, %c0_0] : memref<16x32xf32, #tpu.memory_space<vmem>>, vector<16x32xf32>
    %cst = arith.constant dense<0.000000e+00> : vector<16xf32>
    %1 = vector.multi_reduction <add>, %0, %cst [1] : vector<16x32xf32> to vector<16xf32>
    %2 = vector.shape_cast %1 : vector<16xf32> to vector<16x1xf32>
    %cst_1 = arith.constant 3.200000e+01 : f32
    %3 = vector.broadcast %cst_1 : f32 to vector<16x1xf32>
    %4 = arith.divf %2, %3 : vector<16x1xf32>
    %5 = vector.broadcast %4 : vector<16x1xf32> to vector<16x32xf32>
    %6 = arith.subf %0, %5 : vector<16x32xf32>
    %7 = arith.mulf %6, %6 : vector<16x32xf32>
    %cst_2 = arith.constant dense<0.000000e+00> : vector<16xf32>
    %8 = vector.multi_reduction <add>, %7, %cst_2 [1] : vector<16x32xf32> to vector<16xf32>
    %9 = vector.shape_cast %8 : vector<16xf32> to vector<16x1xf32>
    %cst_3 = arith.constant 3.200000e+01 : f32
    %10 = vector.broadcast %cst_3 : f32 to vector<16x1xf32>
    %11 = arith.divf %9, %10 : vector<16x1xf32>
    %cst_4 = arith.constant 9.99999974E-6 : f32
    %12 = vector.broadcast %cst_4 : f32 to vector<16x1xf32>
    %13 = arith.addf %11, %12 : vector<16x1xf32>
    %14 = math.rsqrt %13 : vector<16x1xf32>
    %15 = vector.broadcast %14 : vector<16x1xf32> to vector<16x32xf32>
    %16 = arith.mulf %6, %15 : vector<16x32xf32>
    %c0_5 = arith.constant 0 : index
    %c0_6 = arith.constant 0 : index
    %17 = vector.load %arg3[%c0_5, %c0_6] : memref<1x32xf32, #tpu.memory_space<vmem>>, vector<1x32xf32>
    %18 = vector.broadcast %17 : vector<1x32xf32> to vector<16x32xf32>
    %19 = arith.mulf %16, %18 : vector<16x32xf32>
    %c0_7 = arith.constant 0 : index
    %c0_8 = arith.constant 0 : index
    %20 = vector.load %arg4[%c0_7, %c0_8] : memref<1x32xf32, #tpu.memory_space<vmem>>, vector<1x32xf32>
    %21 = vector.broadcast %20 : vector<1x32xf32> to vector<16x32xf32>
    %22 = arith.addf %19, %21 : vector<16x32xf32>
    %23 = arith.truncf %22 : vector<16x32xf32> to vector<16x32xbf16>
    %c0_9 = arith.constant 0 : index
    %c0_10 = arith.constant 0 : index
    %24 = vector.load %arg5[%c0_9, %c0_10] : memref<32x32xbf16, #tpu.memory_space<vmem>>, vector<32x32xbf16>
    %cst_11 = arith.constant dense<0.000000e+00> : vector<16x32xf32>
    %25 = tpu.matmul %23, %24, %cst_11 {dimension_numbers = #tpu.dot_dimension_numbers<[1], [0], [0], [1], [0, 0, 1, 1], [], []>} : vector<16x32xbf16>, vector<32x32xbf16>, vector<16x32xf32> -> vector<16x32xf32>
    %c0_12 = arith.constant 0 : index
    %c0_13 = arith.constant 0 : index
    %26 = vector.load %arg6[%c0_12, %c0_13] : memref<1x32xf32, #tpu.memory_space<vmem>>, vector<1x32xf32>
    %27 = vector.broadcast %26 : vector<1x32xf32> to vector<16x32xf32>
    %28 = arith.addf %25, %27 : vector<16x32xf32>
    %29 = tpu.iota {dimensions = array<i32: 0>} : vector<16x32xi32>
    %30 = tpu.iota {dimensions = array<i32: 1>} : vector<16x32xi32>
    %c16_i32 = arith.constant 16 : i32
    %31 = arith.muli %arg0, %c16_i32 : i32
    %32 = vector.broadcast %31 : i32 to vector<16x32xi32>
    %33 = arith.addi %32, %29 : vector<16x32xi32>
    %c0_14 = arith.constant 0 : index
    %34 = memref.load %arg1[%c0_14] : memref<1xi32, #tpu.memory_space<smem>>
    %c-1640531535_i32 = arith.constant -1640531535 : i32
    %35 = vector.broadcast %c-1640531535_i32 : i32 to vector<16x32xi32>
    %36 = arith.muli %33, %35 : vector<16x32xi32>
    %c-2048144777_i32 = arith.constant -2048144777 : i32
    %37 = vector.broadcast %c-2048144777_i32 : i32 to vector<16x32xi32>
    %38 = arith.muli %30, %37 : vector<16x32xi32>
    %39 = arith.xori %36, %38 : vector<16x32xi32>
    %40 = vector.broadcast %34 : i32 to vector<16x32xi32>
    %41 = arith.xori %39, %40 : vector<16x32xi32>
    %c16_i32_15 = arith.constant 16 : i32
    %42 = vector.broadcast %c16_i32_15 : i32 to vector<16x32xi32>
    %43 = arith.shrui %41, %42 : vector<16x32xi32>
    %44 = arith.xori %41, %43 : vector<16x32xi32>
    %c2146121005_i32 = arith.constant 2146121005 : i32
    %45 = vector.broadcast %c2146121005_i32 : i32 to vector<16x32xi32>
    %46 = arith.muli %44, %45 : vector<16x32xi32>
    %c15_i32 = arith.constant 15 : i32
    %47 = vector.broadcast %c15_i32 : i32 to vector<16x32xi32>
    %48 = arith.shrui %46, %47 : vector<16x32xi32>
    %49 = arith.xori %46, %48 : vector<16x32xi32>
    %c-2073254261_i32 = arith.constant -2073254261 : i32
    %50 = vector.broadcast %c-2073254261_i32 : i32 to vector<16x32xi32>
    %51 = arith.muli %49, %50 : vector<16x32xi32>
    %c16_i32_16 = arith.constant 16 : i32
    %52 = vector.broadcast %c16_i32_16 : i32 to vector<16x32xi32>
    %53 = arith.shrui %51, %52 : vector<16x32xi32>
    %54 = arith.xori %51, %53 : vector<16x32xi32>
    %c429496729_i32 = arith.constant 429496729 : i32
    %55 = vector.broadcast %c429496729_i32 : i32 to vector<16x32xi32>
    %56 = arith.cmpi uge, %54, %55 : vector<16x32xi32>
    %cst_17 = arith.constant 1.11111116 : f32
    %57 = vector.broadcast %cst_17 : f32 to vector<16x32xf32>
    %58 = arith.mulf %28, %57 : vector<16x32xf32>
    %cst_18 = arith.constant 0.000000e+00 : f32
    %59 = vector.broadcast %cst_18 : f32 to vector<16x32xf32>
    %60 = arith.select %56, %58, %59 : vector<16x32xi1>, vector<16x32xf32>
    %c0_19 = arith.constant 0 : index
    %c0_20 = arith.constant 0 : index
    %61 = vector.load %arg2[%c0_19, %c0_20] : memref<16x32xf32, #tpu.memory_space<vmem>>, vector<16x32xf32>
    %62 = arith.addf %61, %60 : vector<16x32xf32>
    %c0_21 = arith.constant 0 : index
    %c0_22 = arith.constant 0 : index
    %63 = vector.load %arg7[%c0_21, %c0_22] : memref<16x32xf32, #tpu.memory_space<vmem>>, vector<16x32xf32>
    tpu.vector_store %arg7[%c0_21, %c0_22], %62 {strides = array<i32>} : memref<16x32xf32, #tpu.memory_space<vmem>>, vector<16x32xf32>,
    return
  }
  func.func @transform_0(%arg0: i32, %arg1: memref<1xi32, #tpu.memory_space<smem>>) -> (i32, i32) {
    %c0_i32 = arith.constant 0 : i32
    %c0_i32_0 = arith.constant 0 : i32
    return %arg0, %c0_i32 : i32, i32
  }
  func.func @transform_1(%arg0: i32, %arg1: memref<1xi32, #tpu.memory_space<smem>>) -> (i32, i32) {
    %c0_i32 = arith.constant 0 : i32
    %c0_i32_0 = arith.constant 0 : i32
    %c0_i32_1 = arith.constant 0 : i32
    return %c0_i32, %c0_i32_0 : i32, i32
  }
  func.func @transform_2(%arg0: i32, %arg1: memref<1xi32, #tpu.memory_space<smem>>) -> (i32, i32) {
    %c0_i32 = arith.constant 0 : i32
    %c0_i32_0 = arith.constant 0 : i32
    %c0_i32_1 = arith.constant 0 : i32
    return %c0_i32, %c0_i32_0 : i32, i32
  }
  func.func @transform_3(%arg0: i32, %arg1: memref<1xi32, #tpu.memory_space<smem>>) -> (i32, i32) {
    %c0_i32 = arith.constant 0 : i32
    %c0_i32_0 = arith.constant 0 : i32
    %c0_i32_1 = arith.constant 0 : i32
    return %c0_i32, %c0_i32_0 : i32, i32
  }
  func.func @transform_4(%arg0: i32, %arg1: memref<1xi32, #tpu.memory_space<smem>>) -> (i32, i32) {
    %c0_i32 = arith.constant 0 : i32
    %c0_i32_0 = arith.constant 0 : i32
    %c0_i32_1 = arith.constant 0 : i32
    return %c0_i32, %c0_i32_0 : i32, i32
  }
  func.func @transform_5(%arg0: i32, %arg1: memref<1xi32, #tpu.memory_space<smem>>) -> (i32, i32) {
    %c0_i32 = arith.constant 0 : i32
    %c0_i32_0 = arith.constant 0 : i32
    return %arg0, %c0_i32 : i32, i32
  }
}

</mosaic_0001>

<bundles_post_ra>
// kernel: sublayer_connection.1
= control target key start
LH: loop header
LB: loop body
LE: loop exit
PB: predicated region body
PF: predicated region fallthrough
CT: control target
= control target key end

     0   :  { %vm26_vm0 = vcmask 261120   ;;  %s334_s0 = inlined_call_operand.<no memory space> [shape: s32[1], index: 0, kind: input, shape index: {}]   ;;  %s335_s1 = inlined_call_operand.vmem [shape: f32[16,32], index: 1, kind: input, shape index: {}]   ;;  %s336_s2 = inlined_call_operand.vmem [shape: f32[1,32], index: 2, kind: input, shape index: {}]   ;;  %s337_s3 = inlined_call_operand.vmem [shape: f32[1,32], index: 3, kind: input, shape index: {}]   ;;  %s338_s4 = inlined_call_operand.vmem [shape: bf16[32,32], index: 4, kind: input, shape index: {}]   ;;  %s339_s5 = inlined_call_operand.vmem [shape: f32[1,32], index: 5, kind: input, shape index: {}]   ;;  %s340_s6 = inlined_call_operand.hbm [shape: f32[16,32], index: 6, kind: output, shape index: {}]  }
   0x1   :  { %v293_v0 = vld [vmem:[%s335_s1] sm:$0xff]  ;;  %v298_v1 = vld [vmem:[%s335_s1 + $0x8] sm:$0xff] }
   0x2   :  { %v27_v2 = vsel %vm26_vm0, %v293_v0, 0.0 }
   0x3   :  { %28 = vadd.xlane.f32.xlu0 %v27_v2 }
   0x4   :  { %12 = vsyncpa [#allocation5], 0  ;;  %v30_v3 = vsel %vm26_vm0, %v298_v1, 0.0  ;;  %v222_v14 = vld [vmem:[%s338_s4 + $0x8] sm:$0xff]   ;;  %v250_v15 = vmov 0.0   ;;  %vm251_vm1 = vmmov 0   ;;  %v140_v34 = vlaneseq }
   0x5   :  { %209 = vmatprep.subr.bf16.mxu0 %v250_v15  ;;  %213 = vmatprep.mubr.msk.bf16.mxu0 %vm251_vm1, %v250_v15  ;;  %v223_v16 = vld [vmem:[%s338_s4] sm:$0xff]   ;;  %v155_v42 = vstv %s334_s0  ;;  %s252_s0 = smov [#allocation4]  }
   0x6   :  { %210 = vmatpush3.bf16.msra.mxu0 %v222_v14  ;;  %v200_v25 = vld [vmem:[%s336_s2] ss:$0 sm:$0xff]  ;;  %v141_v35 = vshrl.u32 %v140_v34, 7  ;;  %v144_v36 = vand.u32 127, %v140_v34  ;;  %s189_s9 = sshll.u32 %s252_s0, 4  ;;  %s190_s9 = int_to_ptr.vmem [resolvable:$true] %s189_s9 }
   0x7   :  { %31 = vadd.xlane.f32.xlu0 %v30_v3  ;;  %211 = vmatprep.subr.bf16.mxu0 %v250_v15  ;;  %v201_v29 = vld [vmem:[%s337_s3] ss:$0 sm:$0xff]  ;;  %p233_p1 = scmp.lt.s32.totalorder %s190_s9, %s190_s9 }
   0x8   :  { %v150_v37 = vmul.u32 2654435761, %v141_v35  ;;  %v152_v38 = vmul.u32 2246822519, %v144_v36  ;;  %v142_v39 = vadd.s32 8, %v141_v35 }
   0x9   :  { %v202_v59 = vld [vmem:[%s339_s5] ss:$0 sm:$0xff]  ;;  %s228_s5 = scalar_lea.vmem %s190_s9, 256 }
   0xa   :  { %212 = vmatpush3.bf16.msra.mxu0 %v223_v16  ;;  %v153_v40 = vxor.u32 %v152_v38, %v150_v37  ;;  %v151_v41 = vmul.u32 2654435761, %v142_v39  ;;  %p229_p0 = scmp.ne.s32.totalorder %s190_s9, %s228_s5  ;;  %p234_p2 = scmp.lt.s32.totalorder %s228_s5, %s228_s5 }
   0xc   :  { %v156_v43 = vxor.u32 %v155_v42, %v153_v40  ;;  %v154_v44 = vxor.u32 %v152_v38, %v151_v41  ;;  %p235_p3 = por %p234_p2, %p233_p1 }
   0xe   :  { %v158_v45 = vshrl.u32 %v156_v43, 16  ;;  %v157_v46 = vxor.u32 %v155_v42, %v154_v44  ;;  %p236_p4 = pnand %p235_p3, %p229_p0 }
  0x10   :  { %v160_v47 = vxor.u32 %v158_v45, %v156_v43  ;;  %v159_v48 = vshrl.u32 %v157_v46, 16 }
  0x12   :  { %v162_v49 = vmul.u32 2146121005, %v160_v47  ;;  %v161_v50 = vxor.u32 %v159_v48, %v157_v46 }
  0x14   :  { %v164_v51 = vshrl.u32 %v162_v49, 15  ;;  %v163_v52 = vmul.u32 2146121005, %v161_v50 }
  0x16   :  { %v166_v53 = vxor.u32 %v164_v51, %v162_v49  ;;  %v165_v54 = vshrl.u32 %v163_v52, 15 }
  0x18   :  { %v168_v55 = vmul.u32 2221713035, %v166_v53  ;;  %v167_v56 = vxor.u32 %v165_v54, %v163_v52 }
  0x1a   :  { %v170_v57 = vshrl.u32 %v168_v55, 16  ;;  %v169_v58 = vmul.u32 2221713035, %v167_v56 }
  0x1c   :  { %v172_v60 = vxor.u32 %v170_v57, %v168_v55  ;;  %v171_v61 = vshrl.u32 %v169_v58, 16 }
  0x1e   :  { %vm174_vm2 = vcmp.ge.u32.totalorder %v172_v60, 429496729  ;;  %v173_v3 = vxor.u32 %v171_v61, %v169_v58 }
  0x20   :  { %vm175_vm3 = vcmp.ge.u32.totalorder %v173_v3, 429496729 }
  0x8c   :  { %v29_v4 = vpop.xlane.xlu0 %28 }
  0x8d   :  { %v34_v5 = vmul.f32 0.03125, %v29_v4 }
  0x8f   :  { %v36_v6 = vsub.f32 %v293_v0, %v34_v5 }
  0x90   :  { %v32_v7 = vpop.xlane.xlu0 %31 }
  0x91   :  { %v35_v8 = vmul.f32 0.03125, %v32_v7  ;;  %v38_v9 = vmul.f32 %v36_v6, %v36_v6 }
  0x93   :  { %v37_v10 = vsub.f32 %v298_v1, %v35_v8  ;;  %v40_v11 = vsel %vm26_vm0, %v38_v9, 0.0 }
  0x94   :  { %41 = vadd.xlane.f32.xlu1 %v40_v11 }
  0x95   :  { %v39_v12 = vmul.f32 %v37_v10, %v37_v10 }
  0x97   :  { %v43_v13 = vsel %vm26_vm0, %v39_v12, 0.0 }
  0x98   :  { %44 = vadd.xlane.f32.xlu1 %v43_v13 }
 0x11d   :  { %v42_v17 = vpop.xlane.xlu1 %41 }
 0x11e   :  { %v46_v18 = vmul.f32 0.03125, %v42_v17 }
 0x120   :  { %v48_v19 = vadd.f32 1e-05, %v46_v18 }
 0x121   :  { %v45_v20 = vpop.xlane.xlu1 %44 }
 0x122   :  { %224 = vrsqrt.f32 %v48_v19  ;;  %v47_v21 = vmul.f32 0.03125, %v45_v20 }
 0x124   :  { %v49_v22 = vadd.f32 1e-05, %v47_v21 }
 0x126   :  { %226 = vrsqrt.f32 %v49_v22 }
 0x12f   :  { %v225_v23 = vpop.eup %224 }
 0x130   :  { %v52_v24 = vmul.f32 %v225_v23, %v36_v6 }
 0x132   :  { %v61_v28 = vmul.f32 %v200_v25, %v52_v24 }
 0x133   :  { %v227_v26 = vpop.eup %226 }
 0x134   :  { %v53_v27 = vmul.f32 %v227_v26, %v37_v10  ;;  %v70_v31 = vadd.f32 %v201_v29, %v61_v28 }
 0x136   :  { %v62_v30 = vmul.f32 %v200_v25, %v53_v27 }
 0x138   :  { %v71_v32 = vadd.f32 %v201_v29, %v62_v30 }
 0x13a   :  { %v72_v33 = vpack.c.bf16 %v71_v32, %v70_v31 }
 0x13c   :  { %214 = vmatmul.mubr.msk.bf16.vlgmr.msra.gmra.mxu0 %vm26_vm0, %v72_v33 }
 0x1fc   :  { %v133_v62 = vpop.f32.mrf.mxu0 }
 0x1fd   :  { %v134_v63 = vadd.f32 %v202_v59, %v133_v62 }
 0x1fe   :  { %v215_v2 = vpop.f32.mrf.mxu0 }
 0x1ff   :  { %v176_v4 = vmul.f32 1.1111112, %v134_v63 }
 0x200   :  { %v136_v5 = vpop.f32.mrf.mxu0 }
 0x201   :  { %v178_v6 = vsel %vm174_vm2, %v176_v4, 0.0  ;;  %v137_v7 = vadd.f32 %v202_v59, %v136_v5 }
 0x202   :  { %v180_v8 = vadd.f32 %v178_v6, %v293_v0  ;;  %v216_v9 = vpop.f32.mrf.mxu0 }
 0x203   :  { %v177_v10 = vmul.f32 1.1111112, %v137_v7 }
 0x204   :  { %182 = vst.msk [vmem:[#allocation4] sm:$0xff] %vm26_vm0, %v180_v8 }
 0x205   :  { %v179_v11 = vsel %vm175_vm3, %v177_v10, 0.0 }
 0x206   :  { %v181_v12 = vadd.f32 %v179_v11, %v298_v1 }
 0x208   :  { %183 = vst.msk [vmem:[#allocation4 + $0x8] sm:$0xff] %vm26_vm0, %v181_v12 }
 0x209   :  { %239 = shalt.err (!%p236_p4)
}
 0x20a   :  { %s253_s10 = smov 128   ;;  %s254_s11 = smov 8  }
 0x20b   :  { %195 = dma.vmem_to_hbm [thread:$0]  %s190_s9, 256, %s340_s6, [#allocation5], %s253_s10, %s253_s10, %s254_s11  }
 0x20c   :  { %248 = dma.done.wait [#allocation5], 256  }
 0x20d   :  { %249 = vsyncadd [#allocation5], 4294967040 }
 0x20e   :  { %199 = vsyncpa [#allocation5], 1 }

</bundles_post_ra>
